<compile_context>
chip_gen: v5e
topology: v5e:2x2
jax: 0.10.0
libtpu: 0.0.40
codegen_flags: <defaults>
</compile_context>

<pallas_src>
import functools

import jax
import jax.numpy as jnp
import numpy as np
from jax.experimental import pallas as pl
from jax.experimental.pallas import tpu as pltpu


def ppo_actor_kernel(obs_ref, w1_ref, w2_ref, wh_ref,
                     b1_ref, b2_ref, bh_ref, out_ref, *, n_actions):
    A = n_actions

    # fc1 + tanh   (MXU accumulates in f32 regardless of input dtype)
    x = jnp.tanh(
        jnp.dot(obs_ref[...], w1_ref[...], preferred_element_type=jnp.float32)
        + b1_ref[...].astype(jnp.float32))
    # fc2 + tanh
    x = jnp.tanh(
        jnp.dot(x.astype(w2_ref.dtype), w2_ref[...],
                preferred_element_type=jnp.float32)
        + b2_ref[...].astype(jnp.float32))
    # fused heads: [mean_head | var_head] in one matmul -> (tb, 2A)
    h = (jnp.dot(x.astype(wh_ref.dtype), wh_ref[...],
                 preferred_element_type=jnp.float32)
         + bh_ref[...].astype(jnp.float32))

    # first A lanes -> tanh (mean), last A lanes -> softplus (var)
    lane = jax.lax.broadcasted_iota(jnp.int32, h.shape, 1)
    out = jnp.where(lane < A, jnp.tanh(h), jnp.logaddexp(h, 0.0))
    out_ref[...] = out.astype(out_ref.dtype)


def _pick_batch_tile(B, max_tile):
    """8-aligned batch tile for a cdiv grid.

    Capped at ceil(B/2) so there are >= 2 grid steps whenever B allows, which
    lets the "parallel" batch axis shard across both v7x TensorCores. The grid
    is pl.cdiv(B, tile); a padded tail block is handled (masked) by Pallas.
    """
    if B <= 8:
        return B                              # full-dim block is always legal
    half = -(-B // 2)                         # ceil(B / 2)
    tile = min(max_tile, half)
    tile = ((max(tile, 8) + 7) // 8) * 8      # round up to a multiple of 8
    return tile


def ppo_actor_forward(obs, params, *, tile_b=16384,
                      compute_dtype=jnp.bfloat16, out_dtype=jnp.float32):
    """q, var = PPOActor(obs).  Batch-gridded, weights resident in VMEM."""
    B, S = obs.shape
    H = params["w1"].shape[1]
    A = params["wm"].shape[1]

    # Fuse the two head weights/biases into one (H, 2A) matmul.
    wh = jnp.concatenate([params["wm"], params["wv"]], axis=1)           # (H, 2A)
    bh = jnp.concatenate([params["bm"], params["bv"]], axis=1).astype(jnp.float32)
    b1 = params["b1"].astype(jnp.float32)
    b2 = params["b2"].astype(jnp.float32)
    w1, w2 = params["w1"], params["w2"]

    if compute_dtype is not None:
        # Halves HBM bytes on the dominant obs stream; accumulation and the
        # activation math stay f32 inside the kernel.
        obs = obs.astype(compute_dtype)
        w1 = w1.astype(compute_dtype)
        w2 = w2.astype(compute_dtype)
        wh = wh.astype(compute_dtype)

    tb = _pick_batch_tile(B, tile_b)
    grid = (pl.cdiv(B, tb),)

    in_itemsize = obs.dtype.itemsize
    out_itemsize = jnp.dtype(out_dtype).itemsize
    weight_bytes = ((w1.size + w2.size + wh.size) * w1.dtype.itemsize
                    + (b1.size + b2.size + bh.size) * 4)
    obs_block_bytes = tb * S * in_itemsize
    out_block_bytes = tb * 2 * A * out_itemsize
    # Double-buffered streamed blocks + resident weights + headroom; never ask
    # for more than v7x's 64 MiB physical per-core VMEM.
    vmem_limit = int(min(max(2 * (obs_block_bytes + out_block_bytes)
                             + 2 * weight_bytes + (4 << 20), 16 << 20),
                         64 << 20))

    cost = pl.CostEstimate(
        flops=2 * B * (S * H + H * H + H * 2 * A),
        transcendentals=B * (2 * H + 2 * A),
        bytes_accessed=(B * S * in_itemsize + B * 2 * A * out_itemsize
                        + weight_bytes),
    )

    out = pl.pallas_call(
        functools.partial(ppo_actor_kernel, n_actions=A),
        out_shape=jax.ShapeDtypeStruct((B, 2 * A), out_dtype),
        grid=grid,
        in_specs=[
            pl.BlockSpec((tb, S), lambda i: (i, 0)),         # obs: batch-tiled
            pl.BlockSpec((S, H), lambda i: (0, 0)),          # w1: resident
            pl.BlockSpec((H, H), lambda i: (0, 0)),          # w2: resident
            pl.BlockSpec((H, 2 * A), lambda i: (0, 0)),      # fused head weights
            pl.BlockSpec((1, H), lambda i: (0, 0)),          # b1: resident
            pl.BlockSpec((1, H), lambda i: (0, 0)),          # b2: resident
            pl.BlockSpec((1, 2 * A), lambda i: (0, 0)),      # fused head bias
        ],
        out_specs=pl.BlockSpec((tb, 2 * A), lambda i: (i, 0)),
        compiler_params=pltpu.CompilerParams(
            dimension_semantics=("parallel",),
            vmem_limit_bytes=vmem_limit),
        cost_estimate=cost,
    )(obs, w1, w2, wh, b1, b2, bh)

    return out[:, :A], out[:, A:]


def _reference_forward(obs, p):
    x = jnp.tanh(obs @ p["w1"] + p["b1"])
    x = jnp.tanh(x @ p["w2"] + p["b2"])
    q = jnp.tanh(x @ p["wm"] + p["bm"])
    var = jax.nn.softplus(x @ p["wv"] + p["bv"])
    return q, var


if __name__ == "__main__":
    # Small shapes consistent with the module: hidden_dim=16, n_actions=1.
    B, state_dim, hidden, n_actions = 64, 8, 16, 1

    key = jax.random.PRNGKey(0)
    ks = jax.random.split(key, 9)

    def init(k, shape, fan_in):
        # U(-1/sqrt(fan_in), 1/sqrt(fan_in)), like PyTorch nn.Linear.
        bound = 1.0 / float(np.sqrt(fan_in))
        return jax.random.uniform(k, shape, jnp.float32, -bound, bound)

    params = {
        "w1": init(ks[0], (state_dim, hidden), state_dim),
        "b1": init(ks[1], (1, hidden), state_dim),
        "w2": init(ks[2], (hidden, hidden), hidden),
        "b2": init(ks[3], (1, hidden), hidden),
        "wm": init(ks[4], (hidden, n_actions), hidden),
        "bm": init(ks[5], (1, n_actions), hidden),
        "wv": init(ks[6], (hidden, n_actions), hidden),
        "bv": init(ks[7], (1, n_actions), hidden),
    }
    obs = jax.random.normal(ks[8], (B, state_dim), jnp.float32)

    q_ref, var_ref = _reference_forward(obs, params)

    # 1) f32 path.  Tile is capped at B/2 -> 2 grid steps, so the "parallel"
    #    batch axis has work for both v7x TensorCores.
    q, var = ppo_actor_forward(obs, params, compute_dtype=jnp.float32)
    jax.block_until_ready((q, var))
    np.testing.assert_allclose(np.asarray(q), np.asarray(q_ref), atol=1e-5, rtol=1e-5)
    np.testing.assert_allclose(np.asarray(var), np.asarray(var_ref), atol=1e-5, rtol=1e-5)

    # 2) f32, non-divisible batch + small tile: exercises the cdiv grid with a
    #    padded (masked) tail block and multi-step pipelining.
    obs_odd = obs[:50]
    q_ref2, var_ref2 = _reference_forward(obs_odd, params)
    q2, var2 = ppo_actor_forward(obs_odd, params, tile_b=16,
                                 compute_dtype=jnp.float32)
    jax.block_until_ready((q2, var2))
    np.testing.assert_allclose(np.asarray(q2), np.asarray(q_ref2), atol=1e-5, rtol=1e-5)
    np.testing.assert_allclose(np.asarray(var2), np.asarray(var_ref2), atol=1e-5, rtol=1e-5)

    # 3) Default path: bf16 obs/weights (HBM-bound fast path), f32
    #    accumulation/activations, f32 output.
    q3, var3 = ppo_actor_forward(obs, params)
    jax.block_until_ready((q3, var3))
    np.testing.assert_allclose(np.asarray(q3), np.asarray(q_ref), atol=5e-2, rtol=5e-2)
    np.testing.assert_allclose(np.asarray(var3), np.asarray(var_ref), atol=5e-2, rtol=5e-2)

    print("KERNEL_OK")
</pallas_src>

<mosaic_0001>
module attributes {stable_mosaic.version = 11 : i64} {
  func.func @ppo_actor_kernel(%arg0: i32, %arg1: memref<32x8xf32, #tpu.memory_space<vmem>>, %arg2: memref<8x16xf32, #tpu.memory_space<vmem>>, %arg3: memref<16x16xf32, #tpu.memory_space<vmem>>, %arg4: memref<16x2xf32, #tpu.memory_space<vmem>>, %arg5: memref<1x16xf32, #tpu.memory_space<vmem>>, %arg6: memref<1x16xf32, #tpu.memory_space<vmem>>, %arg7: memref<1x2xf32, #tpu.memory_space<vmem>>, %arg8: memref<32x2xf32, #tpu.memory_space<vmem>>) attributes {dimension_semantics = [#tpu.dimension_semantics<parallel>], iteration_bounds = array<i64: 2>, scalar_prefetch = 0 : i64, scratch_operands = 0 : i64, tpu.core_type = #tpu.core_type<tc>, window_params = [{transform_indices = @transform_0, window_bounds = array<i64: 32, 8>}, {pipeline_mode = #tpu.pipeline_mode<synchronous>, transform_indices = @transform_1, window_bounds = array<i64: 8, 16>}, {pipeline_mode = #tpu.pipeline_mode<synchronous>, transform_indices = @transform_2, window_bounds = array<i64: 16, 16>}, {pipeline_mode = #tpu.pipeline_mode<synchronous>, transform_indices = @transform_3, window_bounds = array<i64: 16, 2>}, {pipeline_mode = #tpu.pipeline_mode<synchronous>, transform_indices = @transform_4, window_bounds = array<i64: 1, 16>}, {pipeline_mode = #tpu.pipeline_mode<synchronous>, transform_indices = @transform_5, window_bounds = array<i64: 1, 16>}, {pipeline_mode = #tpu.pipeline_mode<synchronous>, transform_indices = @transform_6, window_bounds = array<i64: 1, 2>}, {transform_indices = @transform_7, window_bounds = array<i64: 32, 2>}]} {
    %c0 = arith.constant 0 : index
    %c0_0 = arith.constant 0 : index
    %0 = vector.load %arg1[%c0, %c0_0] : memref<32x8xf32, #tpu.memory_space<vmem>>, vector<32x8xf32>
    %c0_1 = arith.constant 0 : index
    %c0_2 = arith.constant 0 : index
    %1 = vector.load %arg2[%c0_1, %c0_2] : memref<8x16xf32, #tpu.memory_space<vmem>>, vector<8x16xf32>
    %cst = arith.constant dense<0.000000e+00> : vector<32x16xf32>
    %2 = tpu.matmul %0, %1, %cst {dimension_numbers = #tpu.dot_dimension_numbers<[1], [0], [0], [1], [0, 0, 1, 1], [], []>} : vector<32x8xf32>, vector<8x16xf32>, vector<32x16xf32> -> vector<32x16xf32>
    %c0_3 = arith.constant 0 : index
    %c0_4 = arith.constant 0 : index
    %3 = vector.load %arg5[%c0_3, %c0_4] : memref<1x16xf32, #tpu.memory_space<vmem>>, vector<1x16xf32>
    %4 = vector.broadcast %3 : vector<1x16xf32> to vector<32x16xf32>
    %5 = arith.addf %2, %4 : vector<32x16xf32>
    %6 = math.tanh %5 : vector<32x16xf32>
    %c0_5 = arith.constant 0 : index
    %c0_6 = arith.constant 0 : index
    %7 = vector.load %arg3[%c0_5, %c0_6] : memref<16x16xf32, #tpu.memory_space<vmem>>, vector<16x16xf32>
    %cst_7 = arith.constant dense<0.000000e+00> : vector<32x16xf32>
    %8 = tpu.matmul %6, %7, %cst_7 {dimension_numbers = #tpu.dot_dimension_numbers<[1], [0], [0], [1], [0, 0, 1, 1], [], []>} : vector<32x16xf32>, vector<16x16xf32>, vector<32x16xf32> -> vector<32x16xf32>
    %c0_8 = arith.constant 0 : index
    %c0_9 = arith.constant 0 : index
    %9 = vector.load %arg6[%c0_8, %c0_9] : memref<1x16xf32, #tpu.memory_space<vmem>>, vector<1x16xf32>
    %10 = vector.broadcast %9 : vector<1x16xf32> to vector<32x16xf32>
    %11 = arith.addf %8, %10 : vector<32x16xf32>
    %12 = math.tanh %11 : vector<32x16xf32>
    %c0_10 = arith.constant 0 : index
    %c0_11 = arith.constant 0 : index
    %13 = vector.load %arg4[%c0_10, %c0_11] : memref<16x2xf32, #tpu.memory_space<vmem>>, vector<16x2xf32>
    %cst_12 = arith.constant dense<0.000000e+00> : vector<32x2xf32>
    %14 = tpu.matmul %12, %13, %cst_12 {dimension_numbers = #tpu.dot_dimension_numbers<[1], [0], [0], [1], [0, 0, 1, 1], [], []>} : vector<32x16xf32>, vector<16x2xf32>, vector<32x2xf32> -> vector<32x2xf32>
    %c0_13 = arith.constant 0 : index
    %c0_14 = arith.constant 0 : index
    %15 = vector.load %arg7[%c0_13, %c0_14] : memref<1x2xf32, #tpu.memory_space<vmem>>, vector<1x2xf32>
    %16 = vector.broadcast %15 : vector<1x2xf32> to vector<32x2xf32>
    %17 = arith.addf %14, %16 : vector<32x2xf32>
    %18 = tpu.iota {dimensions = array<i32: 1>} : vector<32x2xi32>
    %c1_i32 = arith.constant 1 : i32
    %19 = vector.broadcast %c1_i32 : i32 to vector<32x2xi32>
    %20 = arith.cmpi slt, %18, %19 : vector<32x2xi32>
    %21 = math.tanh %17 : vector<32x2xf32>
    %cst_15 = arith.constant 0.000000e+00 : f32
    %22 = vector.broadcast %cst_15 : f32 to vector<32x2xf32>
    %23 = arith.maximumf %17, %22 : vector<32x2xf32>
    %24 = vector.broadcast %cst_15 : f32 to vector<32x2xf32>
    %25 = arith.subf %17, %24 : vector<32x2xf32>
    %26 = arith.cmpf one, %25, %25 : vector<32x2xf32>
    %27 = vector.broadcast %cst_15 : f32 to vector<32x2xf32>
    %28 = arith.addf %17, %27 : vector<32x2xf32>
    %29 = math.absf %25 : vector<32x2xf32>
    %cst_16 = arith.constant 0.000000e+00 : f32
    %30 = vector.broadcast %cst_16 : f32 to vector<32x2xf32>
    %31 = arith.subf %30, %29 : vector<32x2xf32>
    %32 = math.exp %31 : vector<32x2xf32>
    %33 = math.log1p %32 : vector<32x2xf32>
    %34 = arith.addf %23, %33 : vector<32x2xf32>
    %35 = arith.select %26, %28, %34 : vector<32x2xi1>, vector<32x2xf32>
    %36 = arith.select %20, %21, %35 : vector<32x2xi1>, vector<32x2xf32>
    %c0_17 = arith.constant 0 : index
    %c0_18 = arith.constant 0 : index
    %37 = vector.load %arg8[%c0_17, %c0_18] : memref<32x2xf32, #tpu.memory_space<vmem>>, vector<32x2xf32>
    tpu.vector_store %arg8[%c0_17, %c0_18], %36 {strides = array<i32>} : memref<32x2xf32, #tpu.memory_space<vmem>>, vector<32x2xf32>,
    return
  }
  func.func @transform_0(%arg0: i32) -> (i32, i32) {
    %c0_i32 = arith.constant 0 : i32
    %c0_i32_0 = arith.constant 0 : i32
    return %arg0, %c0_i32 : i32, i32
  }
  func.func @transform_1(%arg0: i32) -> (i32, i32) {
    %c0_i32 = arith.constant 0 : i32
    %c0_i32_0 = arith.constant 0 : i32
    %c0_i32_1 = arith.constant 0 : i32
    return %c0_i32, %c0_i32_0 : i32, i32
  }
  func.func @transform_2(%arg0: i32) -> (i32, i32) {
    %c0_i32 = arith.constant 0 : i32
    %c0_i32_0 = arith.constant 0 : i32
    %c0_i32_1 = arith.constant 0 : i32
    return %c0_i32, %c0_i32_0 : i32, i32
  }
  func.func @transform_3(%arg0: i32) -> (i32, i32) {
    %c0_i32 = arith.constant 0 : i32
    %c0_i32_0 = arith.constant 0 : i32
    %c0_i32_1 = arith.constant 0 : i32
    return %c0_i32, %c0_i32_0 : i32, i32
  }
  func.func @transform_4(%arg0: i32) -> (i32, i32) {
    %c0_i32 = arith.constant 0 : i32
    %c0_i32_0 = arith.constant 0 : i32
    %c0_i32_1 = arith.constant 0 : i32
    return %c0_i32, %c0_i32_0 : i32, i32
  }
  func.func @transform_5(%arg0: i32) -> (i32, i32) {
    %c0_i32 = arith.constant 0 : i32
    %c0_i32_0 = arith.constant 0 : i32
    %c0_i32_1 = arith.constant 0 : i32
    return %c0_i32, %c0_i32_0 : i32, i32
  }
  func.func @transform_6(%arg0: i32) -> (i32, i32) {
    %c0_i32 = arith.constant 0 : i32
    %c0_i32_0 = arith.constant 0 : i32
    %c0_i32_1 = arith.constant 0 : i32
    return %c0_i32, %c0_i32_0 : i32, i32
  }
  func.func @transform_7(%arg0: i32) -> (i32, i32) {
    %c0_i32 = arith.constant 0 : i32
    %c0_i32_0 = arith.constant 0 : i32
    return %arg0, %c0_i32 : i32, i32
  }
}

</mosaic_0001>

<bundles_post_ra>
// kernel: tpu_custom_call.1
= control target key start
LH: loop header
LB: loop body
LE: loop exit
PB: predicated region body
PF: predicated region fallthrough
CT: control target
= control target key end

     0   :  { %s706_s24 = smov 0   ;;  %s783_s0 = inlined_call_operand.vmem [shape: f32[64,8], index: 0, kind: input, shape index: {}]   ;;  %s784_s1 = inlined_call_operand.vmem [shape: f32[8,16], index: 1, kind: input, shape index: {}]   ;;  %s785_s2 = inlined_call_operand.vmem [shape: f32[16,16], index: 2, kind: input, shape index: {}]   ;;  %s786_s3 = inlined_call_operand.vmem [shape: f32[16,2], index: 3, kind: input, shape index: {}]   ;;  %s787_s4 = inlined_call_operand.vmem [shape: f32[1,16], index: 4, kind: input, shape index: {}]   ;;  %s788_s5 = inlined_call_operand.vmem [shape: f32[1,16], index: 5, kind: input, shape index: {}]   ;;  %s789_s6 = inlined_call_operand.vmem [shape: f32[1,2], index: 6, kind: input, shape index: {}]   ;;  %s790_s7 = inlined_call_operand.vmem [shape: f32[64,2], index: 7, kind: output, shape index: {}]  }
   0x1 LB: > { %s580_s25 = sadd.s32 4294967295, %s664_s24   ;;  %p584_p0 = scmp.ge.s32.totalorder %s664_s24, 1  ;;  %s664_s24 = sphi %s706_s24, %s17_s24  }
   0x2   : > { %p238_p1 = scmp.lt.s32.totalorder %s664_s24, 3 }
   0x4   : > { %p239_p2 = pnand %p584_p0, %p238_p1 }
   0x5   : > { %s585_s28 = sshll.u32 (!%p239_p2), %s580_s25, 2 }
   0x6   : > { %242 = sbr.rel (%p239_p2) target bundleno = 479 (0x1df), region = 48  ;;  %p271_p3 = scmp.lt.s32.totalorder (!%p239_p2), %s585_s28, 7 }
   0xb   : > { %v286_v0 = vld [vmem:[%s784_s1] sm:$0xff]  ;;  %s792_s28 = smov (!%p271_p3, %s585_s28), 7  ;;  %vm291_vm0 = vcmask 64512   ;;  %v338_v5 = vld [vmem:[%s785_s2 + $0x8] sm:$0xff]  ;;  %vm343_vm1 = vcmask 130048   ;;  %v436_v44 = vlaneseq  ;;  %vm519_vm5 = vcmask 15360  }
   0xc   : > { %319 = vmatpush.msra.mxu0 %v286_v0  ;;  %s586_s29 = sshll.u32 %s792_s28, 3  ;;  %370 = vmatpush.msra.mxu1 %v338_v5  ;;  %v337_v6 = vld [vmem:[%s785_s2] sm:$0xff]  ;;  %v390_v20 = vld [vmem:[%s786_s3 + $0x8] sm:$0xff] }
   0xd   : > { %s274_s9 = scalar_lea.vmem %s783_s0, %s586_s29  ;;  %603 = vmatpush.msra.mxu3 %v338_v5  ;;  %v615_v7 = vld [vmem:[%s787_s4] ss:$0 sm:$0xff]  ;;  %605 = vmatpush.msra.mxu2 %v390_v20  ;;  %v754_v51 = vand.u32 127, %v436_v44  ;;  %s762_s27 = scalar_lea.vmem %s790_s7, %s586_s29 }
   0xe   : > { %v282_v1 = vld [vmem:[%s274_s9] sm:$0xff]  ;;  %v283_v2 = vld [vmem:[%s274_s9 + $0x8] sm:$0xff]  ;;  %v284_v3 = vld [vmem:[%s274_s9 + $0x10] sm:$0xff]  ;;  %371 = vmatpush.msra.mxu1 %v337_v6 }
   0xf   : > { %589 = vmatmul.msk.f32.vlgmr.msra.gmra.mxu0 %vm291_vm0, %v282_v1  ;;  %v285_v4 = vld [vmem:[%s274_s9 + $0x18] sm:$0xff]  ;;  %604 = vmatpush.msra.mxu3 %v337_v6  ;;  %v389_v21 = vld [vmem:[%s786_s3] sm:$0xff]  ;;  %vm438_vm3 = vcmp.lt.s32.totalorder %v754_v51, 1 }
  0x10   : > { %421 = vmatpush.msrb.mxu1 %v390_v20  ;;  %606 = vmatpush.msra.mxu2 %v389_v21  ;;  %v616_v22 = vld [vmem:[%s788_s5] ss:$0 sm:$0xff] }
  0x11   : > { %v617_v35 = vld [vmem:[%s789_s6] ss:$0 sm:$0xff] }
  0x12   : > { %422 = vmatpush.msrb.mxu1 %v389_v21 }
  0x17   : > { %590 = vmatmul.msk.f32.gmra.mxu0 %vm291_vm0, %v283_v2 }
  0x1f   : > { %591 = vmatmul.msk.f32.gmra.mxu0 %vm291_vm0, %v284_v3 }
  0x27   : > { %592 = vmatmul.msk.f32.gmra.mxu0 %vm291_vm0, %v285_v4 }
  0x8c   : > { %v321_v8 = vpop.f32.mrf.mxu0 }
  0x8d   : > { %v322_v9 = vadd.f32 %v615_v7, %v321_v8 }
  0x8f   : > { %618 = vtanh.f32 %v322_v9 }
  0x94   : > { %v324_v10 = vpop.f32.mrf.mxu0 }
  0x95   : > { %v619_v11 = vpop.eup %618  ;;  %v325_v12 = vadd.f32 %v615_v7, %v324_v10 }
  0x96   : > { %593 = vmatmul.msk.f32.vlgmr.msra.gmra.mxu1 %vm343_vm1, %v619_v11 }
  0x97   : > { %620 = vtanh.f32 %v325_v12 }
  0x9c   : > { %v327_v13 = vpop.f32.mrf.mxu0 }
  0x9d   : > { %v621_v14 = vpop.eup %620  ;;  %v328_v15 = vadd.f32 %v615_v7, %v327_v13 }
  0x9e   : > { %594 = vmatmul.msk.f32.vlgmr.msra.gmra.mxu3 %vm343_vm1, %v621_v14 }
  0x9f   : > { %622 = vtanh.f32 %v328_v15 }
  0xa4   : > { %v330_v16 = vpop.f32.mrf.mxu0 }
  0xa5   : > { %v623_v17 = vpop.eup %622  ;;  %v331_v18 = vadd.f32 %v615_v7, %v330_v16 }
  0xa6   : > { %595 = vmatmul.msk.f32.gmra.mxu3 %vm343_vm1, %v623_v17 }
  0xa7   : > { %624 = vtanh.f32 %v331_v18 }
  0xad   : > { %v625_v19 = vpop.eup %624 }
  0xae   : > { %596 = vmatmul.msk.f32.gmra.mxu3 %vm343_vm1, %v625_v19 }
 0x113   : > { %v373_v23 = vpop.f32.mrf.mxu1 }
 0x114   : > { %v374_v24 = vadd.f32 %v616_v22, %v373_v23 }
 0x116   : > { %626 = vtanh.f32 %v374_v24 }
 0x11c   : > { %v627_v25 = vpop.eup %626 }
 0x11d   : > { %597 = vmatmul.msk.f32.vlgmr.msrb.gmra.mxu1 %vm343_vm1, %v627_v25 }
 0x121   : > { %v376_v26 = vpop.f32.mrf.mxu3 }
 0x122   : > { %v377_v27 = vadd.f32 %v616_v22, %v376_v26 }
 0x124   : > { %628 = vtanh.f32 %v377_v27 }
 0x129   : > { %v379_v28 = vpop.f32.mrf.mxu3 }
 0x12a   : > { %v629_v29 = vpop.eup %628  ;;  %v380_v30 = vadd.f32 %v616_v22, %v379_v28 }
 0x12b   : > { %598 = vmatmul.msk.f32.vlgmr.msra.gmra.mxu2 %vm343_vm1, %v629_v29 }
 0x12c   : > { %630 = vtanh.f32 %v380_v30 }
 0x131   : > { %v382_v31 = vpop.f32.mrf.mxu3 }
 0x132   : > { %v631_v32 = vpop.eup %630  ;;  %v383_v33 = vadd.f32 %v616_v22, %v382_v31 }
 0x133   : > { %599 = vmatmul.msk.f32.gmra.mxu2 %vm343_vm1, %v631_v32 }
 0x134   : > { %632 = vtanh.f32 %v383_v33 }
 0x13a   : > { %v633_v34 = vpop.eup %632 }
 0x13b   : > { %600 = vmatmul.msk.f32.gmra.mxu2 %vm343_vm1, %v633_v34 }
 0x19a   : > { %v424_v36 = vpop.f32.mrf.mxu1 }
 0x19b   : > { %v425_v37 = vadd.f32 %v617_v35, %v424_v36 }
 0x19d   : > { %v455_v38 = vand.u32 2147483647, %v425_v37  ;;  %v443_v55 = vmax.f32 %v425_v37, 0.0  ;;  %vm447_vm4 = vcmp.ne.f32.partialorder %v425_v37, %v425_v37 }
 0x19f   : > { %v459_v39 = vsub.f32 0.0, %v455_v38 }
 0x1a1   : > { %v463_v40 = vmul.f32 1.442695, %v459_v39 }
 0x1a3   : > { %634 = vpow2.f32 %v463_v40 }
 0x1a9   : > { %v635_v41 = vpop.eup %634 }
 0x1aa   : > { %v471_v42 = vadd.f32 1.0, %v635_v41  ;;  %v474_v43 = vmul.f32 -0.5, %v635_v41  ;;  %v477_v48 = vand.u32 2147483647, %v635_v41 }
 0x1ac   : > { %636 = vlog2.f32 %v471_v42  ;;  %v475_v46 = vadd.f32 1.0, %v474_v43  ;;  %vm478_vm2 = vcmp.lt.f32.partialorder %v477_v48, 0.0004427343 }
 0x1ad   : > { %638 = vtanh.f32 %v425_v37 }
 0x1ae   : > { %v427_v45 = vpop.f32.mrf.mxu2  ;;  %v476_v53 = vmul.f32 %v635_v41, %v475_v46 }
 0x1af   : > { %v428_v47 = vadd.f32 %v617_v35, %v427_v45 }
 0x1b1   : > { %v456_v49 = vand.u32 2147483647, %v428_v47  ;;  %v444_v17 = vmax.f32 %v428_v47, 0.0  ;;  %vm448_vm7 = vcmp.ne.f32.partialorder %v428_v47, %v428_v47 }
 0x1b2   : > { %v637_v50 = vpop.eup %636 }
 0x1b3   : > { %v473_v52 = vmul.f32 0.6931472, %v637_v50  ;;  %v460_v54 = vsub.f32 0.0, %v456_v49  ;;  %v639_v61 = vpop.eup %638 }
 0x1b5   : > { %v479_v56 = vsel %vm478_vm2, %v476_v53, %v473_v52  ;;  %v465_v57 = vmul.f32 1.442695, %v460_v54 }
 0x1b6   : > { %v507_v58 = vadd.f32 %v479_v56, %v443_v55  ;;  %v430_v59 = vpop.f32.mrf.mxu2 }
 0x1b7   : > { %640 = vpow2.f32 %v465_v57  ;;  %v431_v60 = vadd.f32 %v617_v35, %v430_v59 }
 0x1b8   : > { %v511_v62 = vsel %vm447_vm4, %v425_v37, %v507_v58 }
 0x1b9   : > { %v515_v63 = vsel %vm438_vm3, %v639_v61, %v511_v62  ;;  %v457_v0 = vand.u32 2147483647, %v431_v60  ;;  %v445_v33 = vmax.f32 %v431_v60, 0.0  ;;  %vm449_vm9 = vcmp.ne.f32.partialorder %v431_v60, %v431_v60 }
 0x1ba   : > { %520 = vst.msk [vmem:[%s762_s27] sm:$0xff] %vm519_vm5, %v515_v63 }
 0x1bb   : > { %v461_v1 = vsub.f32 0.0, %v457_v0 }
 0x1bd   : > { %v641_v2 = vpop.eup %640  ;;  %v467_v4 = vmul.f32 1.442695, %v461_v1 }
 0x1be   : > { %v480_v3 = vadd.f32 1.0, %v641_v2  ;;  %v433_v5 = vpop.f32.mrf.mxu2  ;;  %v483_v6 = vmul.f32 -0.5, %v641_v2  ;;  %v486_v11 = vand.u32 2147483647, %v641_v2 }
 0x1bf   : > { %v434_v7 = vadd.f32 %v617_v35, %v433_v5 }
 0x1c0   : > { %642 = vlog2.f32 %v480_v3  ;;  %v484_v9 = vadd.f32 1.0, %v483_v6  ;;  %vm487_vm6 = vcmp.lt.f32.partialorder %v486_v11, 0.0004427343 }
 0x1c1   : > { %644 = vpow2.f32 %v467_v4  ;;  %v458_v8 = vand.u32 2147483647, %v434_v7  ;;  %v446_v44 = vmax.f32 %v434_v7, 0.0  ;;  %vm450_vm11 = vcmp.ne.f32.partialorder %v434_v7, %v434_v7 }
 0x1c2   : > { %646 = vtanh.f32 %v428_v47  ;;  %v485_v16 = vmul.f32 %v641_v2, %v484_v9 }
 0x1c3   : > { %v462_v10 = vsub.f32 0.0, %v458_v8 }
 0x1c5   : > { %v469_v12 = vmul.f32 1.442695, %v462_v10 }
 0x1c6   : > { %v643_v13 = vpop.eup %642 }
 0x1c7   : > { %v645_v14 = vpop.eup %644  ;;  %v482_v15 = vmul.f32 0.6931472, %v643_v13  ;;  %648 = vpow2.f32 %v469_v12 }
 0x1c8   : > { %v489_v18 = vadd.f32 1.0, %v645_v14  ;;  %v492_v20 = vmul.f32 -0.5, %v645_v14  ;;  %v647_v22 = vpop.eup %646  ;;  %v495_v27 = vand.u32 2147483647, %v645_v14 }
 0x1c9   : > { %v488_v19 = vsel %vm487_vm6, %v485_v16, %v482_v15 }
 0x1ca   : > { %v508_v21 = vadd.f32 %v488_v19, %v444_v17  ;;  %650 = vlog2.f32 %v489_v18  ;;  %v493_v26 = vadd.f32 1.0, %v492_v20  ;;  %vm496_vm8 = vcmp.lt.f32.partialorder %v495_v27, 0.0004427343 }
 0x1cb   : > { %652 = vtanh.f32 %v431_v60 }
 0x1cc   : > { %v512_v23 = vsel %vm448_vm7, %v428_v47, %v508_v21  ;;  %v494_v32 = vmul.f32 %v645_v14, %v493_v26 }
 0x1cd   : > { %v649_v24 = vpop.eup %648  ;;  %v516_v25 = vsel %vm438_vm3, %v647_v22, %v512_v23 }
 0x1ce   : > { %521 = vst.msk [vmem:[%s762_s27 + $0x8] sm:$0xff] %vm519_vm5, %v516_v25  ;;  %v498_v28 = vadd.f32 1.0, %v649_v24  ;;  %v501_v29 = vmul.f32 -0.5, %v649_v24  ;;  %v504_v37 = vand.u32 2147483647, %v649_v24 }
 0x1d0   : > { %v651_v30 = vpop.eup %650  ;;  %654 = vlog2.f32 %v498_v28  ;;  %v502_v35 = vadd.f32 1.0, %v501_v29  ;;  %vm505_vm10 = vcmp.lt.f32.partialorder %v504_v37, 0.0004427343 }
 0x1d1   : > { %v491_v31 = vmul.f32 0.6931472, %v651_v30  ;;  %v653_v38 = vpop.eup %652  ;;  %656 = vtanh.f32 %v434_v7 }
 0x1d2   : > { %v503_v43 = vmul.f32 %v649_v24, %v502_v35 }
 0x1d3   : > { %v497_v34 = vsel %vm496_vm8, %v494_v32, %v491_v31 }
 0x1d4   : > { %v509_v36 = vadd.f32 %v497_v34, %v445_v33 }
 0x1d6   : > { %v655_v39 = vpop.eup %654  ;;  %v513_v40 = vsel %vm449_vm9, %v431_v60, %v509_v36 }
 0x1d7   : > { %v517_v41 = vsel %vm438_vm3, %v653_v38, %v513_v40  ;;  %v500_v42 = vmul.f32 0.6931472, %v655_v39  ;;  %v657_v47 = vpop.eup %656 }
 0x1d8   : > { %522 = vst.msk [vmem:[%s762_s27 + $0x10] sm:$0xff] %vm519_vm5, %v517_v41 }
 0x1d9   : > { %v506_v45 = vsel %vm505_vm10, %v503_v43, %v500_v42 }
 0x1da   : > { %v510_v46 = vadd.f32 %v506_v45, %v446_v44 }
 0x1dc   : > { %v514_v48 = vsel %vm450_vm11, %v434_v7, %v510_v46 }
 0x1dd   : > { %v518_v49 = vsel %vm438_vm3, %v657_v47, %v514_v48 }
 0x1de   : > { %523 = vst.msk [vmem:[%s762_s27 + $0x18] sm:$0xff] %vm519_vm5, %v518_v49 }
 0x1df PF: > { %s17_s24 = sadd.s32 1, %s664_s24  }
 0x1e0   : > { %p14_p4 = scmp.ge.s32.totalorder %s17_s24, 4  }
 0x1e2   :  { %16 = sbr.rel (!%p14_p4) target bundleno = 1 (0x1), region = 78 }

</bundles_post_ra>
